<compile_context>
chip_gen: v6e
topology: v6e:2x2x1
jax: 0.10.0
libtpu: 0.0.40
codegen_flags: <defaults>
</compile_context>

<pallas_src>
import jax
import jax.numpy as jnp
from jax.experimental import pallas as pl
from jax.experimental.pallas import tpu as pltpu


# --------------------------------------------------------------------------- #
# Kernel
# --------------------------------------------------------------------------- #
def _mlp_kernel(x_ref, w_in_ref, w_out_ref, o_ref, act_ref, nxt_ref):
    """Grid = (batch_tiles, num_blocks, hidden_chunks).

    act_ref : bf16 [tb, model]  carried activation (already in MXU operand dtype)
    nxt_ref : f32  [tb, model]  per-block down-projection accumulator
    """
    b = pl.program_id(1)           # MLP block index (sequential carry)
    h = pl.program_id(2)           # hidden-dim chunk index (sequential reduction)
    nb = pl.num_programs(1)
    nh = pl.num_programs(2)

    # First step for this batch tile: load the input activation, cast once to bf16.
    @pl.when((b == 0) & (h == 0))
    def _():
        act_ref[...] = x_ref[...].astype(jnp.bfloat16)

    # Up-projection chunk + ReLU (bf16 operands, f32 accumulation on the MXU),
    # then down-projection chunk.
    hid = jnp.dot(act_ref[...], w_in_ref[...], preferred_element_type=jnp.float32)
    hid = jnp.maximum(hid, 0.0)
    part = jnp.dot(hid.astype(jnp.bfloat16), w_out_ref[...],
                   preferred_element_type=jnp.float32)

    # First hidden chunk assigns (saves a zero-store + add); later chunks accumulate.
    @pl.when(h == 0)
    def _():
        nxt_ref[...] = part

    @pl.when(h != 0)
    def _():
        nxt_ref[...] += part

    # End of a block that is not the last: accumulator becomes the new activation.
    @pl.when((h == nh - 1) & (b != nb - 1))
    def _():
        act_ref[...] = nxt_ref[...].astype(jnp.bfloat16)

    # Very last step for this batch tile: emit the result (skip the dead act copy).
    @pl.when((h == nh - 1) & (b == nb - 1))
    def _():
        o_ref[...] = nxt_ref[...].astype(o_ref.dtype)


# --------------------------------------------------------------------------- #
# Generation-aware planning
# --------------------------------------------------------------------------- #
def _tpu_generation_info():
    """(physical per-core VMEM bytes, MXU alignment, TensorCores per chip)."""
    vmem_bytes = 64 * 1024 * 1024          # conservative default (v7x-sized)
    try:
        vmem_bytes = int(pltpu.get_tpu_info().vmem_capacity_bytes)
    except Exception:
        pass
    kind = ""
    try:
        kind = jax.devices()[0].device_kind.lower()
    except Exception:
        pass
    mxu_align = 128 if ("v4" in kind or "v5" in kind) else 256   # v6e/v7x MXU is 2x256^2
    num_cores = 2 if "v7" in kind else 1
    return vmem_bytes, mxu_align, num_cores


def _divisor_tile(dim, unit, cap):
    """Largest multiple of `unit` that divides `dim` and is <= cap; full dim otherwise."""
    if dim % unit != 0 or dim <= unit:
        return dim
    cap = max(unit, min(cap, dim))
    t = (cap // unit) * unit
    while dim % t != 0:
        t -= unit
    return t


def _plan_tiles(batch, model_dim, hidden_dim, x_itemsize):
    vmem_phys, mxu_align, num_cores = _tpu_generation_info()
    budget = int(vmem_phys * 0.70)          # headroom for compiler-internal scratch

    def footprint(tb, th):
        w = 2 * 2 * model_dim * th * 2      # double-buffered bf16 up+down weight chunks
        act = tb * model_dim * 2            # bf16 carried activation
        acc = tb * model_dim * 4            # f32 accumulator
        io = 2 * 2 * tb * model_dim * x_itemsize   # x + out tiles, double-buffered
        return w + act + acc + io

    # Batch tile: as large as VMEM allows (weights are re-streamed from HBM once per
    # batch tile, so HBM traffic ~ 1/tb). Prefer MXU-aligned, else bf16-packed (16).
    if batch % mxu_align == 0:
        b_unit = mxu_align
    elif batch % 16 == 0:
        b_unit = 16
    elif batch % 8 == 0:
        b_unit = 8
    else:
        b_unit = batch
    tb_cap = batch
    if num_cores > 1 and batch % (num_cores * b_unit) == 0:
        tb_cap = batch // num_cores         # >= 2 batch tiles -> both v7x TensorCores busy

    # Hidden chunk unit: MXU-aligned if possible.
    if hidden_dim % mxu_align == 0:
        h_unit = mxu_align
    elif hidden_dim % 128 == 0:
        h_unit = 128
    else:
        h_unit = hidden_dim

    tb = _divisor_tile(batch, b_unit, tb_cap)
    if batch % b_unit == 0:
        while tb > b_unit and footprint(tb, h_unit) > budget:
            tb = _divisor_tile(batch, b_unit, max(b_unit, tb // 2))

    # Hidden tile: as large as the remaining budget allows (nh == 1 removes the
    # accumulator read-modify-write and per-step overhead entirely).
    th = hidden_dim
    if hidden_dim % h_unit == 0:
        while th > h_unit and footprint(tb, th) > budget:
            th = _divisor_tile(hidden_dim, h_unit, max(h_unit, th // 2))

    # VMEM limit: never below the actual footprint, never above physical - headroom.
    vmem_limit = int(min(vmem_phys - (8 << 20),
                         max(2 * footprint(tb, th), 48 << 20)))
    vmem_limit = max(vmem_limit, footprint(tb, th) + (4 << 20))
    vmem_limit = min(vmem_limit, vmem_phys - (4 << 20))
    return tb, th, vmem_limit


# --------------------------------------------------------------------------- #
# Wrappers
# --------------------------------------------------------------------------- #
def prepare_simple_mlp_weights(w_in_stack, w_out_stack):
    """One-time weight-layout conversion (do this at weight-load time, outside the
    per-step forward): PyTorch [out, in] stacks -> bf16 contraction-friendly layout.

    w_in_stack  : [nb, hidden, model] -> [nb, model, hidden] bf16
    w_out_stack : [nb, model, hidden] -> [nb, hidden, model] bf16
    """
    w_in_t = jnp.swapaxes(jnp.asarray(w_in_stack), 1, 2).astype(jnp.bfloat16)
    w_out_t = jnp.swapaxes(jnp.asarray(w_out_stack), 1, 2).astype(jnp.bfloat16)
    return w_in_t, w_out_t


def simple_mlp_pallas(x, w_in_t, w_out_t, *, batch_tile=None, hidden_tile=None):
    """SimpleMLP forward.

    x       : [batch, model_dim]
    w_in_t  : [num_blocks, model_dim, hidden_dim]  bf16 (from prepare_simple_mlp_weights)
    w_out_t : [num_blocks, hidden_dim, model_dim]  bf16
    """
    batch, model_dim = x.shape
    num_blocks, model_dim2, hidden_dim = w_in_t.shape
    assert model_dim == model_dim2
    assert w_out_t.shape == (num_blocks, hidden_dim, model_dim)

    tb, th, vmem_limit = _plan_tiles(batch, model_dim, hidden_dim, x.dtype.itemsize)
    if batch_tile is not None:
        tb = batch_tile
    if hidden_tile is not None:
        th = hidden_tile
    assert batch % tb == 0 and hidden_dim % th == 0

    grid = (batch // tb, num_blocks, hidden_dim // th)

    return pl.pallas_call(
        _mlp_kernel,
        out_shape=jax.ShapeDtypeStruct((batch, model_dim), x.dtype),
        grid_spec=pltpu.PrefetchScalarGridSpec(
            num_scalar_prefetch=0,
            grid=grid,
            in_specs=[
                # Input activation tile: resident across the (block, hidden) axes.
                pl.BlockSpec((tb, model_dim), lambda i, b, h: (i, 0)),
                # Per-block weight chunks; leading stacking axis squeezed away.
                pl.BlockSpec((None, model_dim, th), lambda i, b, h: (b, 0, h)),
                pl.BlockSpec((None, th, model_dim), lambda i, b, h: (b, h, 0)),
            ],
            out_specs=pl.BlockSpec((tb, model_dim), lambda i, b, h: (i, 0)),
            scratch_shapes=[
                pltpu.VMEM((tb, model_dim), jnp.bfloat16),   # carried activation (bf16)
                pltpu.VMEM((tb, model_dim), jnp.float32),    # per-block f32 accumulator
            ],
        ),
        compiler_params=pltpu.CompilerParams(
            dimension_semantics=("parallel", "arbitrary", "arbitrary"),
            vmem_limit_bytes=vmem_limit,
        ),
    )(x, w_in_t, w_out_t)


def simple_mlp_ref(x, w_in_stack, w_out_stack):
    """Pure-JAX reference with the same bf16-operand / f32-accumulate numerics."""
    act = x.astype(jnp.float32)
    for b in range(w_in_stack.shape[0]):
        wi = w_in_stack[b].astype(jnp.bfloat16)    # [hidden, model]
        wo = w_out_stack[b].astype(jnp.bfloat16)   # [model, hidden]
        hid = jnp.dot(act.astype(jnp.bfloat16), wi.T, preferred_element_type=jnp.float32)
        hid = jnp.maximum(hid, 0.0)
        act = jnp.dot(hid.astype(jnp.bfloat16), wo.T, preferred_element_type=jnp.float32)
    return act.astype(x.dtype)


if __name__ == "__main__":
    batch = 16
    model_dim = 128
    hidden_dim = 256
    num_blocks = 4

    key = jax.random.PRNGKey(0)
    kx, kin, kout = jax.random.split(key, 3)

    x = jax.random.normal(kx, (batch, model_dim), dtype=jnp.float32)
    # Deterministic synthetic weights (kaiming-like scaling), PyTorch [out, in] layout.
    w_in_stack = jax.random.normal(kin, (num_blocks, hidden_dim, model_dim),
                                   dtype=jnp.float32) * (1.0 / (model_dim ** 0.5))
    w_out_stack = jax.random.normal(kout, (num_blocks, model_dim, hidden_dim),
                                    dtype=jnp.float32) * (1.0 / (hidden_dim ** 0.5))

    # One-time weight preparation (outside the forward; in a real model this happens
    # at weight-load time, not per step).
    w_in_t, w_out_t = prepare_simple_mlp_weights(w_in_stack, w_out_stack)

    ref = simple_mlp_ref(x, w_in_stack, w_out_stack)

    # Auto-planned tiles (hidden axis typically collapses: nh == 1).
    out = jax.block_until_ready(simple_mlp_pallas(x, w_in_t, w_out_t))
    assert out.shape == (batch, model_dim)
    assert jnp.allclose(out, ref, atol=2e-2, rtol=2e-2), "mismatch vs reference (auto tiles)"

    # Also exercise the chunked-hidden accumulation path explicitly.
    out2 = jax.block_until_ready(simple_mlp_pallas(x, w_in_t, w_out_t, hidden_tile=128))
    assert jnp.allclose(out2, ref, atol=2e-2, rtol=2e-2), "mismatch vs reference (th=128)"

    print("KERNEL_OK")
</pallas_src>

<mosaic_0001>
module attributes {stable_mosaic.version = 11 : i64} {
  func.func @_mlp_kernel(%arg0: i32, %arg1: i32, %arg2: i32, %arg3: memref<16x128xf32, #tpu.memory_space<vmem>>, %arg4: memref<1x128x256xbf16, #tpu.memory_space<vmem>>, %arg5: memref<1x256x128xbf16, #tpu.memory_space<vmem>>, %arg6: memref<16x128xf32, #tpu.memory_space<vmem>>, %arg7: memref<16x128xbf16, #tpu.memory_space<vmem>>, %arg8: memref<16x128xf32, #tpu.memory_space<vmem>>) attributes {dimension_semantics = [#tpu.dimension_semantics<parallel>, #tpu.dimension_semantics<arbitrary>, #tpu.dimension_semantics<arbitrary>], iteration_bounds = array<i64: 1, 4, 1>, scalar_prefetch = 0 : i64, scratch_operands = 2 : i64, tpu.core_type = #tpu.core_type<tc>, window_params = [{transform_indices = @transform_0, window_bounds = array<i64: 16, 128>}, {transform_indices = @transform_1, window_bounds = array<i64: 1, 128, 256>}, {transform_indices = @transform_2, window_bounds = array<i64: 1, 256, 128>}, {transform_indices = @transform_3, window_bounds = array<i64: 16, 128>}]} {
    %c0_i32 = arith.constant 0 : i32
    %0 = arith.cmpi eq, %arg1, %c0_i32 : i32
    %c0_i32_0 = arith.constant 0 : i32
    %1 = arith.cmpi eq, %arg2, %c0_i32_0 : i32
    %2 = arith.andi %0, %1 : i1
    %3 = arith.extui %2 : i1 to i32
    %c0_i32_1 = arith.constant 0 : i32
    %4 = arith.cmpi ne, %3, %c0_i32_1 : i32
    scf.if %4 {
      %c0_20 = arith.constant 0 : index
      %c0_21 = arith.constant 0 : index
      %31 = vector.load %arg3[%c0_20, %c0_21] : memref<16x128xf32, #tpu.memory_space<vmem>>, vector<16x128xf32>
      %32 = arith.truncf %31 : vector<16x128xf32> to vector<16x128xbf16>
      %c0_22 = arith.constant 0 : index
      %c0_23 = arith.constant 0 : index
      %33 = vector.load %arg7[%c0_22, %c0_23] : memref<16x128xbf16, #tpu.memory_space<vmem>>, vector<16x128xbf16>
      tpu.vector_store %arg7[%c0_22, %c0_23], %32 {strides = array<i32>} : memref<16x128xbf16, #tpu.memory_space<vmem>>, vector<16x128xbf16>,
    } else {
    }
    %c0 = arith.constant 0 : index
    %c0_2 = arith.constant 0 : index
    %5 = vector.load %arg7[%c0, %c0_2] : memref<16x128xbf16, #tpu.memory_space<vmem>>, vector<16x128xbf16>
    %c0_3 = arith.constant 0 : index
    %c0_4 = arith.constant 0 : index
    %c0_5 = arith.constant 0 : index
    %6 = vector.load %arg4[%c0_3, %c0_4, %c0_5] : memref<1x128x256xbf16, #tpu.memory_space<vmem>>, vector<1x128x256xbf16>
    %7 = vector.shape_cast %6 : vector<1x128x256xbf16> to vector<128x256xbf16>
    %cst = arith.constant dense<0.000000e+00> : vector<16x256xf32>
    %8 = tpu.matmul %5, %7, %cst {dimension_numbers = #tpu.dot_dimension_numbers<[1], [0], [0], [1], [0, 0, 1, 1], [], []>} : vector<16x128xbf16>, vector<128x256xbf16>, vector<16x256xf32> -> vector<16x256xf32>
    %cst_6 = arith.constant 0.000000e+00 : f32
    %9 = vector.broadcast %cst_6 : f32 to vector<16x256xf32>
    %10 = arith.maximumf %8, %9 : vector<16x256xf32>
    %11 = arith.truncf %10 : vector<16x256xf32> to vector<16x256xbf16>
    %c0_7 = arith.constant 0 : index
    %c0_8 = arith.constant 0 : index
    %c0_9 = arith.constant 0 : index
    %12 = vector.load %arg5[%c0_7, %c0_8, %c0_9] : memref<1x256x128xbf16, #tpu.memory_space<vmem>>, vector<1x256x128xbf16>
    %13 = vector.shape_cast %12 : vector<1x256x128xbf16> to vector<256x128xbf16>
    %cst_10 = arith.constant dense<0.000000e+00> : vector<16x128xf32>
    %14 = tpu.matmul %11, %13, %cst_10 {dimension_numbers = #tpu.dot_dimension_numbers<[1], [0], [0], [1], [0, 0, 1, 1], [], []>} : vector<16x256xbf16>, vector<256x128xbf16>, vector<16x128xf32> -> vector<16x128xf32>
    %c0_i32_11 = arith.constant 0 : i32
    %15 = arith.cmpi eq, %arg2, %c0_i32_11 : i32
    %16 = arith.extui %15 : i1 to i32
    %c0_i32_12 = arith.constant 0 : i32
    %17 = arith.cmpi ne, %16, %c0_i32_12 : i32
    scf.if %17 {
      %c0_20 = arith.constant 0 : index
      %c0_21 = arith.constant 0 : index
      %31 = vector.load %arg8[%c0_20, %c0_21] : memref<16x128xf32, #tpu.memory_space<vmem>>, vector<16x128xf32>
      tpu.vector_store %arg8[%c0_20, %c0_21], %14 {strides = array<i32>} : memref<16x128xf32, #tpu.memory_space<vmem>>, vector<16x128xf32>,
    } else {
    }
    %c0_i32_13 = arith.constant 0 : i32
    %18 = arith.cmpi ne, %arg2, %c0_i32_13 : i32
    %19 = arith.extui %18 : i1 to i32
    %c0_i32_14 = arith.constant 0 : i32
    %20 = arith.cmpi ne, %19, %c0_i32_14 : i32
    scf.if %20 {
      %c0_20 = arith.constant 0 : index
      %c0_21 = arith.constant 0 : index
      %31 = vector.load %arg8[%c0_20, %c0_21] : memref<16x128xf32, #tpu.memory_space<vmem>>, vector<16x128xf32>
      %32 = arith.addf %31, %14 : vector<16x128xf32>
      %c0_22 = arith.constant 0 : index
      %c0_23 = arith.constant 0 : index
      %33 = vector.load %arg8[%c0_22, %c0_23] : memref<16x128xf32, #tpu.memory_space<vmem>>, vector<16x128xf32>
      tpu.vector_store %arg8[%c0_22, %c0_23], %32 {strides = array<i32>} : memref<16x128xf32, #tpu.memory_space<vmem>>, vector<16x128xf32>,
    } else {
    }
    %c0_i32_15 = arith.constant 0 : i32
    %21 = arith.cmpi eq, %arg2, %c0_i32_15 : i32
    %c3_i32 = arith.constant 3 : i32
    %22 = arith.cmpi ne, %arg1, %c3_i32 : i32
    %23 = arith.andi %21, %22 : i1
    %24 = arith.extui %23 : i1 to i32
    %c0_i32_16 = arith.constant 0 : i32
    %25 = arith.cmpi ne, %24, %c0_i32_16 : i32
    scf.if %25 {
      %c0_20 = arith.constant 0 : index
      %c0_21 = arith.constant 0 : index
      %31 = vector.load %arg8[%c0_20, %c0_21] : memref<16x128xf32, #tpu.memory_space<vmem>>, vector<16x128xf32>
      %32 = arith.truncf %31 : vector<16x128xf32> to vector<16x128xbf16>
      %c0_22 = arith.constant 0 : index
      %c0_23 = arith.constant 0 : index
      %33 = vector.load %arg7[%c0_22, %c0_23] : memref<16x128xbf16, #tpu.memory_space<vmem>>, vector<16x128xbf16>
      tpu.vector_store %arg7[%c0_22, %c0_23], %32 {strides = array<i32>} : memref<16x128xbf16, #tpu.memory_space<vmem>>, vector<16x128xbf16>,
    } else {
    }
    %c0_i32_17 = arith.constant 0 : i32
    %26 = arith.cmpi eq, %arg2, %c0_i32_17 : i32
    %c3_i32_18 = arith.constant 3 : i32
    %27 = arith.cmpi eq, %arg1, %c3_i32_18 : i32
    %28 = arith.andi %26, %27 : i1
    %29 = arith.extui %28 : i1 to i32
    %c0_i32_19 = arith.constant 0 : i32
    %30 = arith.cmpi ne, %29, %c0_i32_19 : i32
    scf.if %30 {
      %c0_20 = arith.constant 0 : index
      %c0_21 = arith.constant 0 : index
      %31 = vector.load %arg8[%c0_20, %c0_21] : memref<16x128xf32, #tpu.memory_space<vmem>>, vector<16x128xf32>
      %c0_22 = arith.constant 0 : index
      %c0_23 = arith.constant 0 : index
      %32 = vector.load %arg6[%c0_22, %c0_23] : memref<16x128xf32, #tpu.memory_space<vmem>>, vector<16x128xf32>
      tpu.vector_store %arg6[%c0_22, %c0_23], %31 {strides = array<i32>} : memref<16x128xf32, #tpu.memory_space<vmem>>, vector<16x128xf32>,
    } else {
    }
    return
  }
  func.func @transform_0(%arg0: i32, %arg1: i32, %arg2: i32) -> (i32, i32) {
    %c0_i32 = arith.constant 0 : i32
    %c0_i32_0 = arith.constant 0 : i32
    return %arg0, %c0_i32 : i32, i32
  }
  func.func @transform_1(%arg0: i32, %arg1: i32, %arg2: i32) -> (i32, i32, i32) {
    %c0_i32 = arith.constant 0 : i32
    %c0_i32_0 = arith.constant 0 : i32
    return %arg1, %c0_i32, %arg2 : i32, i32, i32
  }
  func.func @transform_2(%arg0: i32, %arg1: i32, %arg2: i32) -> (i32, i32, i32) {
    %c0_i32 = arith.constant 0 : i32
    %c0_i32_0 = arith.constant 0 : i32
    return %arg1, %arg2, %c0_i32 : i32, i32, i32
  }
  func.func @transform_3(%arg0: i32, %arg1: i32, %arg2: i32) -> (i32, i32) {
    %c0_i32 = arith.constant 0 : i32
    %c0_i32_0 = arith.constant 0 : i32
    return %arg0, %c0_i32 : i32, i32
  }
}

</mosaic_0001>

<bundles_post_ra>
// kernel: tpu_custom_call.1
= control target key start
LH: loop header
LB: loop body
LE: loop exit
PB: predicated region body
PF: predicated region fallthrough
CT: control target
= control target key end

     0   :  { %8 = vsyncpa [#allocation5], 0  ;;  %s1405_s0 = inlined_call_operand.hbm [shape: f32[16,128], index: 0, kind: input, shape index: {}]   ;;  %s1406_s1 = inlined_call_operand.hbm [shape: bf16[4,128,256], index: 1, kind: input, shape index: {}]   ;;  %s1407_s2 = inlined_call_operand.hbm [shape: bf16[4,256,128], index: 2, kind: input, shape index: {}]   ;;  %s1408_s3 = inlined_call_operand.hbm [shape: f32[16,128], index: 3, kind: output, shape index: {}]  }
   0x1   :  { %9 = vsyncpa [#allocation8], 0 }
   0x2   :  { %11 = vsyncpa [#allocation8 + $0x1], 0 }
   0x3   :  { %12 = vsyncpa [#allocation6], 0  ;;  %s1193_s12 = smov 0   ;;  %s1195_s13 = smov 0  }
   0x4   :  { %s1197_s14 = smov 0   ;;  %s1199_s15 = smov 0  }
   0x5   :  { %s1201_s16 = smov 0   ;;  %s1203_s17 = smov 0  }
   0x6 LB: > { %s33_s18 = sadd.s32 1, %s1156_s16  ;;  %s72_s19 = sadd.s32 1, %s1148_s14  ;;  %s1160_s17 = sphi %s1203_s17, %s18_s17   ;;  %s1156_s16 = sphi %s1201_s16, %s1418_s16   ;;  %s1152_s15 = sphi %s1199_s15, %s1417_s15   ;;  %s1148_s14 = sphi %s1197_s14, %s1416_s14   ;;  %s1144_s13 = sphi %s1195_s13, %s1415_s13   ;;  %s1140_s12 = sphi %s1193_s12, %s1414_s12  }
   0x7   : > { %p35_p0 = scmp.ge.s32.totalorder %s33_s18, 4  ;;  %p79_p1 = scmp.ne.s32.totalorder %s1148_s14, %s1144_s13 }
   0x8   : > { %p80_p2 = scmp.eq.s32.totalorder %s1160_s17, 0  ;;  %p894_p5 = scmp.lt.s32.totalorder %s1160_s17, 4 }
   0x9   : > { %s1420_s18 = smov (%p35_p0, %s33_s18), 0  ;;  %s179_s22 = sand.u32 1, %s1160_s17  }
   0xa   : > { %p1230_p3 = por %p80_p2, %p79_p1  ;;  %s67_s21 = ssub.s32 %s1156_s16, %s1420_s18 }
   0xb   : > { %p70_p4 = scmp.eq.s32.totalorder %s67_s21, 0  ;;  %s181_s23 = sand.u32 1, %s1148_s14  }
   0xc   : > { %s1242_s25 = sshll.u32 %s181_s23, 7  ;;  %s829_s26 = sshll.u32 %s1156_s16, 11 }
   0xd   : > { %s1240_s24 = scalar_select %p70_p4, %s1148_s14, %s72_s19  }
   0xe   : > { %s191_s29 = scalar_lea.hbm %s1406_s1, %s829_s26  ;;  %s183_s30 = scalar_lea.vmem [#allocation7], %s1242_s25 }
   0xf   : > { %s192_s4 = sshll.u32 %s183_s30, 4  ;;  %p1251_p6 = pnand %p894_p5, %p1230_p3  ;;  %s193_s4 = int_to_ptr.vmem [resolvable:$true] %s192_s4 }
  0x10   : > { %s1258_s8 = scalar_lea.hbm %s1407_s2, %s829_s26  ;;  %s1260_s9 = scalar_lea.sflag [#allocation8], %s179_s22 }
  0x11   : > { %p998_p7 = pneg %p1251_p6  ;;  %s1009_s10 = scalar_lea.vmem %s193_s4, 2048 }
  0x12   : > { %p1010_p8 = scmp.ne.s32.totalorder %s193_s4, %s1009_s10  ;;  %s1162_s11 = smov [#allocation7]  }
  0x13   : > { %s1014_s19 = sshll.u32 %s1162_s11, 4  ;;  %s1015_s19 = int_to_ptr.vmem [resolvable:$false] %s1014_s19 }
  0x14   : > { %p1012_p9 = pnand %p1010_p8, %p998_p7  ;;  %s1016_s20 = scalar_lea.vmem %s1015_s19, 4096 }
  0x15   : > { %p1017_p11 = scmp.lt.s32.totalorder %s193_s4, %s1015_s19  ;;  %p1018_p12 = scmp.lt.s32.totalorder %s1016_s20, %s1009_s10 }
  0x16   : > { %p1013_p10 = pneg %p1012_p9 }
  0x17   : > { %p1019_p13 = por %p1018_p12, %p1017_p11 }
  0x19   : > { %p1020_p0 = pnand %p1019_p13, %p1013_p10 }
  0x1b   : > { %1023 = shalt.err (!%p1020_p0)
}
  0x1c   : > { %s1163_s21 = smov 128   ;;  %s1164_s22 = smov 8  }
  0x1d   : > { %889 = dma.hbm_to_vmem [thread:$0]  (!%p1251_p6), %s191_s29, 2048, %s193_s4, %s1260_s9, %s1163_s21, %s1163_s21, %s1164_s22  }
  0x1e   : > { %s206_s23 = scalar_lea.vmem [#allocation9], %s1242_s25  ;;  %s1275_s27 = sadd.s32 4294967295, %s1160_s17  }
  0x1f   : > { %s215_s26 = sshll.u32 %s206_s23, 4  ;;  %p85_p1 = scmp.ne.s32.totalorder %s1144_s13, %s1140_s12  ;;  %s216_s26 = int_to_ptr.vmem [resolvable:$true] %s215_s26 }
  0x20   : > { %p86_p2 = scmp.eq.s32.totalorder %s1275_s27, 0  ;;  %p772_p3 = scmp.ge.s32.totalorder %s1160_s17, 1 }
  0x21   : > { %p150_p4 = scmp.lt.s32.totalorder %s1160_s17, 5  ;;  %s1165_s25 = smov [#allocation4]  }
  0x22   : > { %p1284_p5 = por %p86_p2, %p85_p1  ;;  %s165_s29 = sshll.u32 %s1165_s25, 4  ;;  %s1294_s29 = int_to_ptr.vmem [resolvable:$true] %s165_s29 }
  0x23   : > { %p1288_p8 = pnand %p772_p3, %p150_p4  ;;  %s1037_s4 = scalar_lea.vmem %s216_s26, 2048 }
  0x24   : > { %p1038_p11 = scmp.ne.s32.totalorder %s216_s26, %s1037_s4  ;;  %s1166_s6 = smov [#allocation9]  }
  0x25   : > { %p882_p9 = pneg %p1288_p8  ;;  %s1042_s7 = sshll.u32 %s1166_s6, 4  ;;  %s1043_s7 = int_to_ptr.vmem [resolvable:$false] %s1042_s7 }
  0x26   : > { %p1040_p12 = pnand %p1038_p11, %p998_p7  ;;  %s1044_s10 = scalar_lea.vmem %s1043_s7, 4096 }
  0x27   : > { %p1298_p10 = pnand %p882_p9, %p86_p2  ;;  %p1045_p0 = scmp.lt.s32.totalorder %s216_s26, %s1043_s7 }
  0x28   : > { %p1041_p13 = pneg %p1040_p12  ;;  %p1046_p1 = scmp.lt.s32.totalorder %s1044_s10, %s1037_s4 }
  0x2a   : > { %p1047_p3 = por %p1046_p1, %p1045_p0 }
  0x2c   : > { %p1048_p4 = pnand %p1047_p3, %p1041_p13 }
  0x2e   : > { %1051 = shalt.err (!%p1048_p4)
}
  0x2f   : > { %s1167_s11 = smov 64   ;;  %s1168_s19 = smov 4  }
  0x30   : > { %892 = dma.hbm_to_vmem [thread:$0]  (!%p1251_p6), %s1258_s8, 2048, %s216_s26, %s1260_s9, %s1167_s11, %s1167_s11, %s1168_s19  }
  0x31   : > { %p1054_p7 = pneg %p1298_p10  ;;  %s1063_s20 = scalar_lea.vmem %s1294_s29, 256 }
  0x32   : > { %p1064_p9 = scmp.ne.s32.totalorder %s1294_s29, %s1063_s20  ;;  %p1071_p13 = scmp.lt.s32.totalorder %s1294_s29, %s1294_s29 }
  0x33   : > { %p1072_p0 = scmp.lt.s32.totalorder %s1063_s20, %s1063_s20 }
  0x34   : > { %p1066_p11 = pnand %p1064_p9, %p1054_p7 }
  0x35   : > { %p1073_p1 = por %p1072_p0, %p1071_p13 }
  0x36   : > { %p1067_p12 = pneg %p1066_p11 }
  0x38   : > { %p1074_p3 = pnand %p1073_p1, %p1067_p12 }
  0x3a   : > { %1077 = shalt.err (!%p1074_p3)
}
  0x3b   : > { %885 = dma.hbm_to_vmem [thread:$0]  (!%p1298_p10), %s1405_s0, 256, %s1294_s29, [#allocation5], %s1163_s21, %s1163_s21, %s1164_s22  }
  0x3c   : > { %227 = sbr.rel (%p1288_p8) target bundleno = 550 (0x226), region = 32 }
  0x41   : > { %1127 = dma.done.wait (%p86_p2), [#allocation5], 256  }
  0x42   : > { %1129 = vsyncadd (%p86_p2), [#allocation5], 4294967040  ;;  %s233_s9 = sand.u32 1, %s1275_s27   ;;  %s235_s23 = sand.u32 1, %s1144_s13  }
  0x43   : > { %s783_s26 = sshll.u32 %s235_s23, 7  ;;  %s234_s25 = scalar_lea.sflag [#allocation8], %s233_s9 }
  0x44   : > { %s1332_s12 = scalar_lea.vmem [#allocation7], %s783_s26 }
  0x45   : > { %1131 = dma.done.wait (%p1284_p5), %s234_s25, 4096  }
  0x46   : > { %1133 = vsyncadd (%p1284_p5), %s234_s25, 4294963200  ;;  %p274_p6 = scmp.eq.s32.totalorder %s1152_s15, 0  ;;  %s1339_s21 = scalar_lea.vmem [#allocation9], %s783_s26 }
  0x47   : > { %v280_v0 = vld [vmem:[#allocation4] sm:$0xff] (%p274_p6)  ;;  %v281_v1 = vld [vmem:[#allocation4 + $0x8] sm:$0xff] (%p274_p6) }
  0x48   : > { %279 = sbr.rel (!%p274_p6) target bundleno = 77 (0x4d), region = 48  ;;  %v841_v2 = vpack.c.bf16 (%p274_p6), %v281_v1, %v280_v0 }
  0x4a   : > { %842 = vst [vmem:[#allocation2] sm:$0xff] (%p274_p6), %v841_v2  }
  0x4d PF: > { %v955_v3 = vld [vmem:[%s1332_s12 + $0x74] ss:$8 sps:$4 sm:$0xff]   ;;  %v957_v4 = vld [vmem:[%s1332_s12 + $0x70] ss:$8 sps:$4 sm:$0xff]   ;;  %v1169_v5 = vmov 0   ;;  %v984_v19 = vld [vmem:[%s1339_s21 + $0x68] sm:$0xff]  }
  0x4e   : > { %428 = vmatprep.mubr.bf16.mxu0 %v1169_v5  ;;  %396 = vmatprep.subr.bf16.mxu0 %v955_v3  ;;  %v958_v6 = vld [vmem:[%s1332_s12 + $0x64] ss:$8 sps:$4 sm:$0xff]   ;;  %v960_v7 = vld [vmem:[%s1332_s12 + $0x60] ss:$8 sps:$4 sm:$0xff]   ;;  %v961_v8 = vld [vmem:[%s1332_s12 + $0x54] ss:$8 sps:$4 sm:$0xff]  }
  0x4f   : > { %397 = vmatpush1.bf16.msra.mxu0 %v957_v4  ;;  %v963_v9 = vld [vmem:[%s1332_s12 + $0x50] ss:$8 sps:$4 sm:$0xff]   ;;  %v964_v10 = vld [vmem:[%s1332_s12 + $0x44] ss:$8 sps:$4 sm:$0xff]   ;;  %v966_v11 = vld [vmem:[%s1332_s12 + $0x40] ss:$8 sps:$4 sm:$0xff]  }
  0x50   : > { %398 = vmatprep.subr.bf16.mxu0 %v958_v6  ;;  %v967_v12 = vld [vmem:[%s1332_s12 + $0x34] ss:$8 sps:$4 sm:$0xff]   ;;  %v969_v14 = vld [vmem:[%s1332_s12 + $0x30] ss:$8 sps:$4 sm:$0xff]   ;;  %v970_v16 = vld [vmem:[%s1332_s12 + $0x24] ss:$8 sps:$4 sm:$0xff]  }
  0x51   : > { %v980_v13 = vld [vmem:[%s1339_s21 + $0x78] sm:$0xff]   ;;  %v982_v17 = vld [vmem:[%s1339_s21 + $0x70] sm:$0xff]   ;;  %v972_v20 = vld [vmem:[%s1332_s12 + $0x20] ss:$8 sps:$4 sm:$0xff]   ;;  %p629_p2 = scmp.ne.s32.totalorder %s1152_s15, 3 }
  0x52   : > { %v981_v15 = vld [vmem:[%s1339_s21 + $0x38] sm:$0xff]   ;;  %848 = vmatprep.subr.bf16.mxu1 %v980_v13  ;;  %v983_v18 = vld [vmem:[%s1339_s21 + $0x30] sm:$0xff]   ;;  %v985_v22 = vld [vmem:[%s1339_s21 + $0x28] sm:$0xff]  }
  0x53   : > { %399 = vmatpush1.bf16.msra.mxu0 %v960_v7  ;;  %849 = vmatpush3.bf16.msra.mxu1 %v981_v15  ;;  %v973_v21 = vld [vmem:[%s1332_s12 + $0x14] ss:$8 sps:$4 sm:$0xff]   ;;  %v986_v23 = vld [vmem:[%s1339_s21 + $0x60] sm:$0xff]   ;;  %v975_v24 = vld [vmem:[%s1332_s12 + $0x10] ss:$8 sps:$4 sm:$0xff]  }
  0x54   : > { %400 = vmatprep.subr.bf16.mxu0 %v961_v8  ;;  %850 = vmatprep.subr.bf16.mxu1 %v982_v17  ;;  %v987_v25 = vld [vmem:[%s1339_s21 + $0x20] sm:$0xff]   ;;  %v988_v27 = vld [vmem:[%s1339_s21 + $0x58] sm:$0xff]   ;;  %v990_v31 = vld [vmem:[%s1339_s21 + $0x50] sm:$0xff]  }
  0x55   : > { %v976_v26 = vld [vmem:[%s1332_s12 + $0x4] ss:$8 sps:$4 sm:$0xff]   ;;  %v978_v28 = vld [vmem:[%s1332_s12] ss:$8 sps:$4 sm:$0xff]   ;;  %v989_v29 = vld [vmem:[%s1339_s21 + $0x18] sm:$0xff]  }
  0x56   : > { %v979_v30 = vld [vmem:[#allocation2] sm:$0xff]   ;;  %v991_v32 = vld [vmem:[%s1339_s21 + $0x10] sm:$0xff]   ;;  %v992_v33 = vld [vmem:[%s1339_s21 + $0x48] sm:$0xff]  }
  0x57   : > { %401 = vmatpush1.bf16.msra.mxu0 %v963_v9  ;;  %851 = vmatpush3.bf16.msra.mxu1 %v983_v18  ;;  %v993_v34 = vld [vmem:[%s1339_s21 + $0x8] sm:$0xff]   ;;  %v994_v35 = vld [vmem:[%s1339_s21 + $0x40] sm:$0xff]  }
  0x58   : > { %402 = vmatprep.subr.bf16.mxu0 %v964_v10  ;;  %852 = vmatprep.subr.bf16.mxu1 %v984_v19  ;;  %v995_v36 = vld [vmem:[%s1339_s21] sm:$0xff]  }
  0x5b   : > { %403 = vmatpush1.bf16.msra.mxu0 %v966_v11  ;;  %853 = vmatpush3.bf16.msra.mxu1 %v985_v22 }
  0x5c   : > { %404 = vmatprep.subr.bf16.mxu0 %v967_v12  ;;  %854 = vmatprep.subr.bf16.mxu1 %v986_v23 }
  0x5f   : > { %405 = vmatpush1.bf16.msra.mxu0 %v969_v14  ;;  %855 = vmatpush3.bf16.msra.mxu1 %v987_v25 }
  0x60   : > { %406 = vmatprep.subr.bf16.mxu0 %v970_v16  ;;  %856 = vmatprep.subr.bf16.mxu1 %v988_v27 }
  0x63   : > { %407 = vmatpush1.bf16.msra.mxu0 %v972_v20  ;;  %857 = vmatpush3.bf16.msra.mxu1 %v989_v29 }
  0x64   : > { %408 = vmatprep.subr.bf16.mxu0 %v973_v21  ;;  %858 = vmatprep.subr.bf16.mxu1 %v990_v31 }
  0x67   : > { %409 = vmatpush1.bf16.msra.mxu0 %v975_v24  ;;  %859 = vmatpush3.bf16.msra.mxu1 %v991_v32 }
  0x68   : > { %410 = vmatprep.subr.bf16.mxu0 %v976_v26  ;;  %860 = vmatprep.subr.bf16.mxu1 %v992_v33 }
  0x6b   : > { %411 = vmatpush1.bf16.msra.mxu0 %v978_v28  ;;  %861 = vmatpush3.bf16.msra.mxu1 %v993_v34 }
  0x6c   : > { %862 = vmatprep.subr.bf16.mxu1 %v994_v35 }
  0x6e   : > { %429 = vmatmul.mubr.bf16.vlgmr.msra.gmra.mxu0 %v979_v30 }
  0x6f   : > { %863 = vmatpush3.bf16.msra.mxu1 %v995_v36 }
 0x12e   : > { %v430_v37 = vpop.f32.mrf.mxu0 }
 0x12f   : > { %v439_v44 = vmax.f32 %v430_v37, 0.0 }
 0x130   : > { %v432_v38 = vpop.f32.mrf.mxu0 }
 0x131   : > { %v440_v42 = vmax.f32 %v432_v38, 0.0 }
 0x132   : > { %v434_v39 = vpop.f32.mrf.mxu0 }
 0x133   : > { %v441_v40 = vmax.f32 %v434_v39, 0.0 }
 0x134   : > { %v436_v41 = vpop.f32.mrf.mxu0 }
 0x135   : > { %v442_v43 = vmax.f32 %v436_v41, 0.0  ;;  %v443_v46 = vpack.c.bf16 %v441_v40, %v439_v44 }
 0x137   : > { %v444_v45 = vpack.c.bf16 %v442_v43, %v440_v42 }
 0x139   : > { %605 = vmatprep.mubr.bf16.mxu1 %v444_v45 }
 0x13a   : > { %606 = vmatmul.mubr.bf16.vlgmr.msra.gmra.mxu1 %v443_v46 }
 0x1fa   : > { %v864_v47 = vpop.f32.mrf.mxu1 }
 0x1fc   : > { %v865_v48 = vpop.f32.mrf.mxu1 }
 0x1fd   : > { %v866_v49 = vadd.f32 %v865_v48, %v864_v47 }
 0x1fe   : > { %v867_v50 = vpop.f32.mrf.mxu1 }
 0x1ff   : > { %617 = vst [vmem:[#allocation3] sm:$0xff] %v866_v49  ;;  %633 = sbr.rel (!%p629_p2) target bundleno = 526 (0x20e), region = 60 }
 0x200   : > { %v868_v51 = vpop.f32.mrf.mxu1 }
 0x201   : > { %v869_v52 = vadd.f32 %v868_v51, %v867_v50 }
 0x203   : > { %618 = vst [vmem:[#allocation3 + $0x8] sm:$0xff] %v869_v52 }
 0x206   : > { %v634_v53 = vld [vmem:[#allocation3] sm:$0xff] }
 0x20a   : > { %v635_v54 = vld [vmem:[#allocation3 + $0x8] sm:$0xff] }
 0x20b   : > { %v846_v55 = vpack.c.bf16 %v635_v54, %v634_v53 }
 0x20d   : > { %847 = vst [vmem:[#allocation2] sm:$0xff] %v846_v55  }
 0x20e PF: > { %p646_p5 = scmp.eq.s32.totalorder %s1152_s15, 3 }
 0x210   : > { %650 = sbr.rel (!%p646_p5) target bundleno = 534 (0x216), region = 64  ;;  %v651_v56 = vld [vmem:[#allocation3] sm:$0xff] (%p646_p5) }
 0x211   : > { %653 = vst [vmem:[#allocation10] sm:$0xff] (%p646_p5), %v651_v56 }
 0x214   : > { %v652_v57 = vld [vmem:[#allocation3 + $0x8] sm:$0xff] (%p646_p5) }
 0x215   : > { %654 = vst [vmem:[#allocation10 + $0x8] sm:$0xff] %v652_v57 }
 0x216 PF: > { %p896_p8 = scmp.eq.s32.totalorder %s1275_s27, 3  ;;  %s1170_s22 = smov [#allocation10]  }
 0x217   : > { %s664_s28 = sshll.u32 %s1170_s22, 4  ;;  %s665_s28 = int_to_ptr.vmem [resolvable:$true] %s664_s28 }
 0x218   : > { %s1078_s30 = scalar_lea.vmem %s665_s28, 256  ;;  %p1085_p9 = scmp.lt.s32.totalorder %s665_s28, %s665_s28 }
 0x219   : > { %p1079_p10 = scmp.ne.s32.totalorder %s665_s28, %s1078_s30  ;;  %p1086_p11 = scmp.lt.s32.totalorder %s1078_s30, %s1078_s30 }
 0x21b   : > { %p1080_p4 = pnand %p1079_p10, %p896_p8  ;;  %p1087_p12 = por %p1086_p11, %p1085_p9 }
 0x21d   : > { %p1081_p7 = pneg %p1080_p4 }
 0x21f   : > { %p1088_p13 = pnand %p1087_p12, %p1081_p7 }
 0x221   : > { %1091 = shalt.err (!%p1088_p13)
}
 0x222   : > { %s1171_s15 = smov 128   ;;  %s1172_s29 = smov 8  }
 0x223   : > { %879 = dma.vmem_to_hbm [thread:$0]  (%p896_p8), %s665_s28, 256, %s1408_s3, [#allocation6], %s1171_s15, %s1171_s15, %s1172_s29  }
 0x224   : > { %1135 = dma.done.wait (%p896_p8), [#allocation6], 256  }
 0x225   : > { %1137 = vsyncadd (%p896_p8), [#allocation6], 4294967040 }
 0x226 PF: > { %s18_s17 = sadd.s32 1, %s1160_s17   ;;  %s1414_s12 = smov %s1144_s13 }
 0x227   : > { %p15_p0 = scmp.ge.s32.totalorder %s18_s17, 6   ;;  %s1415_s13 = smov %s1148_s14 }
 0x228   : > { %s1416_s14 = smov %s1240_s24  ;;  %s1417_s15 = smov %s1156_s16 }
 0x229   : > { %s1418_s16 = smov %s1420_s18  ;;  %17 = sbr.rel (!%p15_p0) target bundleno = 6 (0x6), region = 107 }
 0x22e   :  { %680 = vsyncpa [#allocation5], 1 }
 0x22f   :  { %682 = vsyncpa [#allocation5 + $0x1], 1 }
 0x230   :  { %683 = vsyncpa [#allocation8], 1 }
 0x231   :  { %685 = vsyncpa [#allocation8 + $0x1], 1 }
 0x232   :  { %686 = vsyncpa [#allocation6], 1 }
 0x233   :  { %688 = vsyncpa [#allocation6 + $0x1], 1 }

</bundles_post_ra>
